<compile_context>
chip_gen: v7x
topology: tpu7x:2x2x1
jax: 0.10.0
libtpu: 0.0.40
codegen_flags: <defaults>
</compile_context>

<pallas_src>
from functools import partial

import jax
import jax.numpy as jnp
from jax import lax
from jax.experimental import pallas as pl
from jax.experimental.pallas import tpu as pltpu


def _round_up(x, m):
    return pl.cdiv(x, m) * m


def _l2_normalize(emb):
    # torch F.normalize(dim=-1): x / max(||x||_2, 1e-12)
    #   == x * rsqrt(max(||x||^2, 1e-24))  (rsqrt issues on the EUP slot)
    s = jnp.sum(emb * emb, axis=-1, keepdims=True)
    return emb * lax.rsqrt(jnp.maximum(s, 1e-24))


# ---------------------------------------------------------------------------
# Path A: small table, fully resident in VMEM.  ids live in SMEM (scalar
# prefetch); rows are gathered with dynamic pl.ds loads driven by scalar ids.
# ---------------------------------------------------------------------------
def _vmem_gather_kernel(ids_ref, table_ref, out_ref, *, block_b,
                        num_embeddings, normalized):
    base = pl.program_id(0) * block_b

    def gather_row(r, carry):
        idx = ids_ref[base + r]
        # Cheap scalar clamp: guards against VMEM OOB reads (no runtime check).
        idx = jnp.clip(idx, 0, num_embeddings - 1)
        out_ref[pl.ds(r, 1), :] = table_ref[pl.ds(idx, 1), :]
        return carry

    lax.fori_loop(0, block_b, gather_row, 0, unroll=block_b <= 16)

    if normalized:
        emb = out_ref[...].astype(jnp.float32)
        out_ref[...] = _l2_normalize(emb).astype(out_ref.dtype)


# ---------------------------------------------------------------------------
# Path B: large table stays in HBM.  The BlockSpec index_map does the gather
# (one table row DMA'd per inner grid step, driven by scalar-prefetched ids);
# the output block stays resident across the inner axis so it is written back
# as a dense (block_b, D) slab.
# ---------------------------------------------------------------------------
def _hbm_gather_kernel(ids_ref, row_ref, out_ref, *, normalized):
    del ids_ref  # consumed by the index_map (BlockSpec-level gather)
    j = pl.program_id(1)
    emb = row_ref[0].astype(jnp.float32)          # (1, D)
    if normalized:
        emb = _l2_normalize(emb)
    out_ref[pl.ds(j, 1), :] = emb.astype(out_ref.dtype)


def embedding_forward(ids, table, *, normalized_embedding=True, block_b=256,
                      table_vmem_budget_bytes=32 * 1024 * 1024):
    """ids: (B,) int indices in [0, V); table: (V, D) float32 embedding table."""
    b = int(ids.shape[0])
    v, d = int(table.shape[0]), int(table.shape[1])
    table = table.astype(jnp.float32)

    # Deterministic handling of out-of-range ids (torch raises; we clamp).
    ids = jnp.clip(ids.astype(jnp.int32), 0, v - 1)

    # Large batch tiles (memory-bound kernel: amortize per-step overhead),
    # padded so every grid step is a full, (8,128)-friendly slab.
    block_b = int(min(block_b, _round_up(b, 8)))
    padded_b = int(_round_up(b, block_b))
    if padded_b != b:
        ids = jnp.pad(ids, (0, padded_b - b))     # pad index 0; rows discarded
    num_blocks = padded_b // block_b

    out_shape = jax.ShapeDtypeStruct((padded_b, d), jnp.float32)
    table_bytes = v * d * 4

    if table_bytes <= table_vmem_budget_bytes:
        # ---- Path A: VMEM-resident table ----
        kernel = partial(_vmem_gather_kernel, block_b=block_b,
                         num_embeddings=v, normalized=normalized_embedding)
        compiler_kwargs = dict(dimension_semantics=("parallel",))
        vmem_needed = table_bytes + 2 * block_b * d * 4 + (2 << 20)
        if vmem_needed > (16 << 20):
            # Raise the default scoped VMEM limit when a big table is resident.
            compiler_kwargs["vmem_limit_bytes"] = int(min(vmem_needed, 100 << 20))
        out = pl.pallas_call(
            kernel,
            out_shape=out_shape,
            grid_spec=pltpu.PrefetchScalarGridSpec(
                num_scalar_prefetch=1,
                grid=(num_blocks,),
                in_specs=[pl.BlockSpec((v, d), lambda i, ids_ref: (0, 0))],
                out_specs=pl.BlockSpec((block_b, d), lambda i, ids_ref: (i, 0)),
            ),
            compiler_params=pltpu.CompilerParams(**compiler_kwargs),
        )(ids, table)
    else:
        # ---- Path B: table in HBM, BlockSpec-level row gather ----
        kernel = partial(_hbm_gather_kernel, normalized=normalized_embedding)
        table3 = table.reshape(v, 1, d)           # keep last-two block dims legal
        out = pl.pallas_call(
            kernel,
            out_shape=out_shape,
            grid_spec=pltpu.PrefetchScalarGridSpec(
                num_scalar_prefetch=1,
                grid=(num_blocks, block_b),
                in_specs=[pl.BlockSpec(
                    (1, 1, d),
                    lambda i, j, ids_ref: (ids_ref[i * block_b + j], 0, 0))],
                out_specs=pl.BlockSpec((block_b, d),
                                       lambda i, j, ids_ref: (i, 0)),
            ),
            compiler_params=pltpu.CompilerParams(
                dimension_semantics=("parallel", "arbitrary")),
        )(ids, table3)

    return out[:b]


# TODO(synk): normalize_obs (RunningMeanStd update/normalize + NaN raise) and
# random_embedding.use_random_embeddings (fmod-indexed random vectors) are
# disabled in this config and not implemented.

if __name__ == "__main__":
    # Module shapes: num_in = vocabulary size, num_out = embedding dim.
    num_in, num_out = 16, 32
    batch = 8

    key = jax.random.PRNGKey(0)
    k_tab, k_ids = jax.random.split(key)

    table = jax.random.normal(k_tab, (num_in, num_out), dtype=jnp.float32)
    obs = jax.random.randint(k_ids, (batch,), 0, num_in, dtype=jnp.int32)

    # Pure-JAX reference: gather + L2 normalize along last dim (torch semantics).
    ref = table[obs]
    ref = ref / jnp.maximum(
        jnp.sqrt(jnp.sum(ref * ref, axis=-1, keepdims=True)), 1e-12)

    # Small table -> VMEM-resident gather path.
    out_vmem = jax.block_until_ready(
        embedding_forward(obs, table, normalized_embedding=True))
    # Force the large-table path (table kept in HBM, index_map gather).
    out_hbm = jax.block_until_ready(
        embedding_forward(obs, table, normalized_embedding=True,
                          table_vmem_budget_bytes=0))
    # Ragged batch (tests padding / tail handling).
    obs_tail = obs[:5]
    out_tail = jax.block_until_ready(
        embedding_forward(obs_tail, table, normalized_embedding=True))

    assert out_vmem.shape == (batch, num_out)
    assert out_hbm.shape == (batch, num_out)
    assert out_tail.shape == (5, num_out)
    assert jnp.allclose(out_vmem, ref, atol=1e-3, rtol=1e-3)
    assert jnp.allclose(out_hbm, ref, atol=1e-3, rtol=1e-3)
    assert jnp.allclose(out_tail, ref[:5], atol=1e-3, rtol=1e-3)
    print("KERNEL_OK")
</pallas_src>

<mosaic_0001>
module attributes {stable_mosaic.version = 11 : i64} {
  func.func @_vmem_gather_kernel(%arg0: i32, %arg1: memref<8xi32, #tpu.memory_space<smem>>, %arg2: memref<16x32xf32, #tpu.memory_space<vmem>>, %arg3: memref<8x32xf32, #tpu.memory_space<vmem>>) attributes {dimension_semantics = [#tpu.dimension_semantics<parallel>], iteration_bounds = array<i64: 1>, scalar_prefetch = 1 : i64, scratch_operands = 0 : i64, tpu.core_type = #tpu.core_type<tc>, window_params = [{pipeline_mode = #tpu.pipeline_mode<synchronous>, transform_indices = @transform_0, window_bounds = array<i64: 16, 32>}, {transform_indices = @transform_1, window_bounds = array<i64: 8, 32>}]} {
    %c8_i32 = arith.constant 8 : i32
    %0 = arith.muli %arg0, %c8_i32 : i32
    %c0_i32 = arith.constant 0 : i32
    %1 = arith.addi %0, %c0_i32 : i32
    %2 = arith.index_cast %1 : i32 to index
    %3 = memref.load %arg1[%2] : memref<8xi32, #tpu.memory_space<smem>>
    %c0_i32_0 = arith.constant 0 : i32
    %c15_i32 = arith.constant 15 : i32
    %4 = arith.maxsi %c0_i32_0, %3 : i32
    %5 = arith.minsi %c15_i32, %4 : i32
    %6 = arith.index_cast %5 : i32 to index
    %c0 = arith.constant 0 : index
    %7 = vector.load %arg2[%6, %c0] : memref<16x32xf32, #tpu.memory_space<vmem>>, vector<1x32xf32>
    %8 = arith.index_cast %c0_i32 : i32 to index
    %c0_1 = arith.constant 0 : index
    %9 = vector.load %arg3[%8, %c0_1] : memref<8x32xf32, #tpu.memory_space<vmem>>, vector<1x32xf32>
    tpu.vector_store %arg3[%8, %c0_1], %7 {strides = array<i32>} : memref<8x32xf32, #tpu.memory_space<vmem>>, vector<1x32xf32>,
    %c1_i32 = arith.constant 1 : i32
    %10 = arith.addi %0, %c1_i32 : i32
    %11 = arith.index_cast %10 : i32 to index
    %12 = memref.load %arg1[%11] : memref<8xi32, #tpu.memory_space<smem>>
    %c0_i32_2 = arith.constant 0 : i32
    %c15_i32_3 = arith.constant 15 : i32
    %13 = arith.maxsi %c0_i32_2, %12 : i32
    %14 = arith.minsi %c15_i32_3, %13 : i32
    %15 = arith.index_cast %14 : i32 to index
    %c0_4 = arith.constant 0 : index
    %16 = vector.load %arg2[%15, %c0_4] : memref<16x32xf32, #tpu.memory_space<vmem>>, vector<1x32xf32>
    %17 = arith.index_cast %c1_i32 : i32 to index
    %c0_5 = arith.constant 0 : index
    %18 = vector.load %arg3[%17, %c0_5] : memref<8x32xf32, #tpu.memory_space<vmem>>, vector<1x32xf32>
    tpu.vector_store %arg3[%17, %c0_5], %16 {strides = array<i32>} : memref<8x32xf32, #tpu.memory_space<vmem>>, vector<1x32xf32>,
    %c2_i32 = arith.constant 2 : i32
    %19 = arith.addi %0, %c2_i32 : i32
    %20 = arith.index_cast %19 : i32 to index
    %21 = memref.load %arg1[%20] : memref<8xi32, #tpu.memory_space<smem>>
    %c0_i32_6 = arith.constant 0 : i32
    %c15_i32_7 = arith.constant 15 : i32
    %22 = arith.maxsi %c0_i32_6, %21 : i32
    %23 = arith.minsi %c15_i32_7, %22 : i32
    %24 = arith.index_cast %23 : i32 to index
    %c0_8 = arith.constant 0 : index
    %25 = vector.load %arg2[%24, %c0_8] : memref<16x32xf32, #tpu.memory_space<vmem>>, vector<1x32xf32>
    %26 = arith.index_cast %c2_i32 : i32 to index
    %c0_9 = arith.constant 0 : index
    %27 = vector.load %arg3[%26, %c0_9] : memref<8x32xf32, #tpu.memory_space<vmem>>, vector<1x32xf32>
    tpu.vector_store %arg3[%26, %c0_9], %25 {strides = array<i32>} : memref<8x32xf32, #tpu.memory_space<vmem>>, vector<1x32xf32>,
    %c3_i32 = arith.constant 3 : i32
    %28 = arith.addi %0, %c3_i32 : i32
    %29 = arith.index_cast %28 : i32 to index
    %30 = memref.load %arg1[%29] : memref<8xi32, #tpu.memory_space<smem>>
    %c0_i32_10 = arith.constant 0 : i32
    %c15_i32_11 = arith.constant 15 : i32
    %31 = arith.maxsi %c0_i32_10, %30 : i32
    %32 = arith.minsi %c15_i32_11, %31 : i32
    %33 = arith.index_cast %32 : i32 to index
    %c0_12 = arith.constant 0 : index
    %34 = vector.load %arg2[%33, %c0_12] : memref<16x32xf32, #tpu.memory_space<vmem>>, vector<1x32xf32>
    %35 = arith.index_cast %c3_i32 : i32 to index
    %c0_13 = arith.constant 0 : index
    %36 = vector.load %arg3[%35, %c0_13] : memref<8x32xf32, #tpu.memory_space<vmem>>, vector<1x32xf32>
    tpu.vector_store %arg3[%35, %c0_13], %34 {strides = array<i32>} : memref<8x32xf32, #tpu.memory_space<vmem>>, vector<1x32xf32>,
    %c4_i32 = arith.constant 4 : i32
    %37 = arith.addi %0, %c4_i32 : i32
    %38 = arith.index_cast %37 : i32 to index
    %39 = memref.load %arg1[%38] : memref<8xi32, #tpu.memory_space<smem>>
    %c0_i32_14 = arith.constant 0 : i32
    %c15_i32_15 = arith.constant 15 : i32
    %40 = arith.maxsi %c0_i32_14, %39 : i32
    %41 = arith.minsi %c15_i32_15, %40 : i32
    %42 = arith.index_cast %41 : i32 to index
    %c0_16 = arith.constant 0 : index
    %43 = vector.load %arg2[%42, %c0_16] : memref<16x32xf32, #tpu.memory_space<vmem>>, vector<1x32xf32>
    %44 = arith.index_cast %c4_i32 : i32 to index
    %c0_17 = arith.constant 0 : index
    %45 = vector.load %arg3[%44, %c0_17] : memref<8x32xf32, #tpu.memory_space<vmem>>, vector<1x32xf32>
    tpu.vector_store %arg3[%44, %c0_17], %43 {strides = array<i32>} : memref<8x32xf32, #tpu.memory_space<vmem>>, vector<1x32xf32>,
    %c5_i32 = arith.constant 5 : i32
    %46 = arith.addi %0, %c5_i32 : i32
    %47 = arith.index_cast %46 : i32 to index
    %48 = memref.load %arg1[%47] : memref<8xi32, #tpu.memory_space<smem>>
    %c0_i32_18 = arith.constant 0 : i32
    %c15_i32_19 = arith.constant 15 : i32
    %49 = arith.maxsi %c0_i32_18, %48 : i32
    %50 = arith.minsi %c15_i32_19, %49 : i32
    %51 = arith.index_cast %50 : i32 to index
    %c0_20 = arith.constant 0 : index
    %52 = vector.load %arg2[%51, %c0_20] : memref<16x32xf32, #tpu.memory_space<vmem>>, vector<1x32xf32>
    %53 = arith.index_cast %c5_i32 : i32 to index
    %c0_21 = arith.constant 0 : index
    %54 = vector.load %arg3[%53, %c0_21] : memref<8x32xf32, #tpu.memory_space<vmem>>, vector<1x32xf32>
    tpu.vector_store %arg3[%53, %c0_21], %52 {strides = array<i32>} : memref<8x32xf32, #tpu.memory_space<vmem>>, vector<1x32xf32>,
    %c6_i32 = arith.constant 6 : i32
    %55 = arith.addi %0, %c6_i32 : i32
    %56 = arith.index_cast %55 : i32 to index
    %57 = memref.load %arg1[%56] : memref<8xi32, #tpu.memory_space<smem>>
    %c0_i32_22 = arith.constant 0 : i32
    %c15_i32_23 = arith.constant 15 : i32
    %58 = arith.maxsi %c0_i32_22, %57 : i32
    %59 = arith.minsi %c15_i32_23, %58 : i32
    %60 = arith.index_cast %59 : i32 to index
    %c0_24 = arith.constant 0 : index
    %61 = vector.load %arg2[%60, %c0_24] : memref<16x32xf32, #tpu.memory_space<vmem>>, vector<1x32xf32>
    %62 = arith.index_cast %c6_i32 : i32 to index
    %c0_25 = arith.constant 0 : index
    %63 = vector.load %arg3[%62, %c0_25] : memref<8x32xf32, #tpu.memory_space<vmem>>, vector<1x32xf32>
    tpu.vector_store %arg3[%62, %c0_25], %61 {strides = array<i32>} : memref<8x32xf32, #tpu.memory_space<vmem>>, vector<1x32xf32>,
    %c7_i32 = arith.constant 7 : i32
    %64 = arith.addi %0, %c7_i32 : i32
    %65 = arith.index_cast %64 : i32 to index
    %66 = memref.load %arg1[%65] : memref<8xi32, #tpu.memory_space<smem>>
    %c0_i32_26 = arith.constant 0 : i32
    %c15_i32_27 = arith.constant 15 : i32
    %67 = arith.maxsi %c0_i32_26, %66 : i32
    %68 = arith.minsi %c15_i32_27, %67 : i32
    %69 = arith.index_cast %68 : i32 to index
    %c0_28 = arith.constant 0 : index
    %70 = vector.load %arg2[%69, %c0_28] : memref<16x32xf32, #tpu.memory_space<vmem>>, vector<1x32xf32>
    %71 = arith.index_cast %c7_i32 : i32 to index
    %c0_29 = arith.constant 0 : index
    %72 = vector.load %arg3[%71, %c0_29] : memref<8x32xf32, #tpu.memory_space<vmem>>, vector<1x32xf32>
    tpu.vector_store %arg3[%71, %c0_29], %70 {strides = array<i32>} : memref<8x32xf32, #tpu.memory_space<vmem>>, vector<1x32xf32>,
    %c8_i32_30 = arith.constant 8 : i32
    %c0_31 = arith.constant 0 : index
    %c0_32 = arith.constant 0 : index
    %73 = vector.load %arg3[%c0_31, %c0_32] : memref<8x32xf32, #tpu.memory_space<vmem>>, vector<8x32xf32>
    %74 = arith.mulf %73, %73 : vector<8x32xf32>
    %cst = arith.constant dense<0.000000e+00> : vector<8xf32>
    %75 = vector.multi_reduction <add>, %74, %cst [1] : vector<8x32xf32> to vector<8xf32>
    %76 = vector.shape_cast %75 : vector<8xf32> to vector<8x1xf32>
    %cst_33 = arith.constant 1.000000e-24 : f32
    %77 = vector.broadcast %cst_33 : f32 to vector<8x1xf32>
    %78 = arith.maximumf %76, %77 : vector<8x1xf32>
    %79 = math.rsqrt %78 : vector<8x1xf32>
    %80 = vector.broadcast %79 : vector<8x1xf32> to vector<8x32xf32>
    %81 = arith.mulf %73, %80 : vector<8x32xf32>
    %c0_34 = arith.constant 0 : index
    %c0_35 = arith.constant 0 : index
    %82 = vector.load %arg3[%c0_34, %c0_35] : memref<8x32xf32, #tpu.memory_space<vmem>>, vector<8x32xf32>
    tpu.vector_store %arg3[%c0_34, %c0_35], %81 {strides = array<i32>} : memref<8x32xf32, #tpu.memory_space<vmem>>, vector<8x32xf32>,
    return
  }
  func.func @transform_0(%arg0: i32, %arg1: memref<8xi32, #tpu.memory_space<smem>>) -> (i32, i32) {
    %c0_i32 = arith.constant 0 : i32
    %c0_i32_0 = arith.constant 0 : i32
    %c0_i32_1 = arith.constant 0 : i32
    return %c0_i32, %c0_i32_0 : i32, i32
  }
  func.func @transform_1(%arg0: i32, %arg1: memref<8xi32, #tpu.memory_space<smem>>) -> (i32, i32) {
    %c0_i32 = arith.constant 0 : i32
    %c0_i32_0 = arith.constant 0 : i32
    return %arg0, %c0_i32 : i32, i32
  }
}

</mosaic_0001>

<bundles_post_ra>
// kernel: tpu_custom_call.1
= control target key start
LH: loop header
LB: loop body
LE: loop exit
PB: predicated region body
PF: predicated region fallthrough
CT: control target
= control target key end

     0   :  { %s353_s0 = inlined_call_operand.hbm [shape: s32[8], index: 0, kind: input, shape index: {}]   ;;  %s354_s1 = inlined_call_operand.hbm [shape: f32[16,32], index: 1, kind: input, shape index: {}]   ;;  %s355_s2 = inlined_call_operand.hbm [shape: f32[8,32], index: 2, kind: output, shape index: {}]  }
   0x1   :  { %s204_s11 = scalar_lea.hbm %s353_s0, 16 }
   0x2   :  { %p205_p0 = scmp.ne.s32.totalorder %s353_s0, %s204_s11  ;;  %p208_p1 = scmp.lt.u32.totalorder %s204_s11, %s353_s0 }
   0x4   :  { %p210_p2 = pnand %p208_p1, %p205_p0 }
   0x6   :  { %213 = shalt.err (!%p210_p2)  }
   0x7   :  { %s264_s16 = smov [#allocation3]  }
   0x8   :  { %8 = dma.hbm_to_smem %s353_s0, 16, %s264_s16, [#allocation2] }
   0x9   :  { %258 = dma.done.wait [#allocation2], 16 }
   0xa   :  { %259 = vsyncadd [#allocation2], 4294967280 }
   0xb   :  { %10 = sfence }
   0xc   :  { %11 = vsyncpa [#allocation5], 0 }
   0xd   :  { %12 = vsyncpa [#allocation6], 0  ;;  %s265_s19 = smov [#allocation4]   ;;  %s214_s23 = scalar_lea.hbm %s354_s1, 256 }
   0xe   :  { %s18_s20 = sshll.u32 %s265_s19, 4  ;;  %p215_p3 = scmp.ne.s32.totalorder %s354_s1, %s214_s23  ;;  %s19_s20 = int_to_ptr.vmem [resolvable:$true] %s18_s20 }
   0xf   :  { %p218_p4 = scmp.lt.u32.totalorder %s214_s23, %s354_s1 }
  0x11   :  { %p220_p5 = pnand %p218_p4, %p215_p3 }
  0x13   :  { %223 = shalt.err (!%p220_p5)
}
  0x14   :  { %s224_s0 = scalar_lea.vmem %s19_s20, 256  ;;  %p229_p7 = scmp.lt.s32.totalorder %s19_s20, %s19_s20 }
  0x15   :  { %p225_p6 = scmp.ne.s32.totalorder %s19_s20, %s224_s0  ;;  %p230_p8 = scmp.lt.s32.totalorder %s224_s0, %s224_s0 }
  0x17   :  { %p231_p9 = por %p230_p8, %p229_p7 }
  0x19   :  { %p232_p10 = pnand %p231_p9, %p225_p6 }
  0x1b   :  { %235 = shalt.err (!%p232_p10)
}
  0x1c   :  { %s266_s28 = smov 128   ;;  %s267_s29 = smov 8  }
  0x1d   :  { %24 = dma.hbm_to_vmem [thread:$0]  %s354_s1, 256, %s19_s20, [#allocation5], %s266_s28, %s266_s28, %s267_s29  }
  0x1e   :  { %260 = dma.done.wait [#allocation5], 256  }
  0x1f   :  { %261 = vsyncadd [#allocation5], 4294967040  ;;  %s29_s4 = sld [smem:[#allocation3]]  ;;  %s139_s5 = sld [smem:[#allocation3 + $0x1]]  ;;  %vm36_vm0 = vcmask 253952   ;;  %vm103_vm1 = vcmask 261120  }
  0x20   :  { %s145_s6 = sld [smem:[#allocation3 + $0x2]]  ;;  %s308_s7 = sld [smem:[#allocation3 + $0x3]] }
  0x21   :  { %s310_s8 = sld [smem:[#allocation3 + $0x4]]  ;;  %s312_s9 = sld [smem:[#allocation3 + $0x5]] }
  0x22   :  { %s314_s10 = sld [smem:[#allocation3 + $0x6]]  ;;  %s316_s11 = sld [smem:[#allocation3 + $0x7]] }
  0x23   :  { %s268_s21 = smov [#allocation7]  }
  0x24   :  { %s117_s22 = sshll.u32 %s268_s21, 4  ;;  %s118_s22 = int_to_ptr.vmem [resolvable:$true] %s117_s22 }
  0x25   :  { %p30_p11 = scmp.gt.s32.totalorder %s29_s4, 0  ;;  %p134_p12 = scmp.lt.s32.totalorder %s29_s4, 15 }
  0x26   :  { %p40_p13 = scmp.gt.s32.totalorder %s139_s5, 0  ;;  %p140_p0 = scmp.lt.s32.totalorder %s139_s5, 15 }
  0x27   :  { %s357_s4 = smov (!%p30_p11, %s29_s4), 0  ;;  %p49_p1 = scmp.gt.s32.totalorder %s145_s6, 0 }
  0x28   :  { %s359_s5 = smov (!%p40_p13, %s139_s5), 0  ;;  %s361_s4 = smov (!%p134_p12, %s357_s4), 15 }
  0x29   :  { %s363_s5 = smov (!%p140_p0, %s359_s5), 15  ;;  %s34_s1 = scalar_lea.vmem [#allocation4], %s361_s4 }
  0x2a   :  { %v35_v0 = vld [vmem:[%s34_s1] sm:$0x1]  ;;  %p146_p2 = scmp.lt.s32.totalorder %s145_s6, 15  ;;  %s44_s12 = scalar_lea.vmem [#allocation4], %s363_s5 }
  0x2b   :  { %37 = vst.msk [vmem:[#allocation7] sm:$0x1] %vm36_vm0, %v35_v0  ;;  %v45_v1 = vld [vmem:[%s44_s12] sm:$0x1]  ;;  %s365_s6 = smov (!%p49_p1, %s145_s6), 0  ;;  %p58_p3 = scmp.gt.s32.totalorder %s308_s7, 0 }
  0x2c   :  { %46 = vst.msk [vmem:[#allocation7 + $0x1] sm:$0x1] %vm36_vm0, %v45_v1  ;;  %p152_p4 = scmp.lt.s32.totalorder %s308_s7, 15  ;;  %s367_s6 = smov (!%p146_p2, %s365_s6), 15 }
  0x2d   :  { %s369_s7 = smov (!%p58_p3, %s308_s7), 0  ;;  %p67_p5 = scmp.gt.s32.totalorder %s310_s8, 0 }
  0x2e   :  { %s53_s13 = scalar_lea.vmem [#allocation4], %s367_s6  ;;  %s371_s7 = smov (!%p152_p4, %s369_s7), 15 }
  0x2f   :  { %v54_v2 = vld [vmem:[%s53_s13] sm:$0x1]  ;;  %s68_s14 = scalar_select %p67_p5, %s310_s8, 0 }
  0x30   :  { %55 = vst.msk [vmem:[#allocation7 + $0x2] sm:$0x1] %vm36_vm0, %v54_v2  ;;  %p158_p6 = scmp.lt.s32.totalorder %s310_s8, 15  ;;  %s62_s15 = scalar_lea.vmem [#allocation4], %s371_s7 }
  0x31   :  { %v63_v3 = vld [vmem:[%s62_s15] sm:$0x1]  ;;  %p76_p7 = scmp.gt.s32.totalorder %s312_s9, 0  ;;  %p164_p8 = scmp.lt.s32.totalorder %s312_s9, 15 }
  0x32   :  { %64 = vst.msk [vmem:[#allocation7 + $0x3] sm:$0x1] %vm36_vm0, %v63_v3  ;;  %s373_s14 = smov (!%p158_p6, %s68_s14), 15  ;;  %p85_p9 = scmp.gt.s32.totalorder %s314_s10, 0 }
  0x33   :  { %s375_s9 = smov (!%p76_p7, %s312_s9), 0  ;;  %s71_s16 = scalar_lea.vmem [#allocation4], %s373_s14 }
  0x34   :  { %v72_v4 = vld [vmem:[%s71_s16] sm:$0x1]  ;;  %s377_s9 = smov (!%p164_p8, %s375_s9), 15  ;;  %p170_p10 = scmp.lt.s32.totalorder %s314_s10, 15 }
  0x35   :  { %73 = vst.msk [vmem:[#allocation7 + $0x4] sm:$0x1] %vm36_vm0, %v72_v4  ;;  %s86_s17 = scalar_select %p85_p9, %s314_s10, 0 }
  0x36   :  { %s80_s18 = scalar_lea.vmem [#allocation4], %s377_s9  ;;  %p94_p11 = scmp.gt.s32.totalorder %s316_s11, 0 }
  0x37   :  { %v81_v5 = vld [vmem:[%s80_s18] sm:$0x1]  ;;  %p176_p12 = scmp.lt.s32.totalorder %s316_s11, 15  ;;  %s379_s17 = smov (!%p170_p10, %s86_s17), 15 }
  0x38   :  { %82 = vst.msk [vmem:[#allocation7 + $0x5] sm:$0x1] %vm36_vm0, %v81_v5  ;;  %s381_s11 = smov (!%p94_p11, %s316_s11), 0  ;;  %s89_s19 = scalar_lea.vmem [#allocation4], %s379_s17 }
  0x39   :  { %v90_v6 = vld [vmem:[%s89_s19] sm:$0x1]  ;;  %s383_s11 = smov (!%p176_p12, %s381_s11), 15  ;;  %s236_s23 = scalar_lea.vmem %s118_s22, 128 }
  0x3a   :  { %91 = vst.msk [vmem:[#allocation7 + $0x6] sm:$0x1] %vm36_vm0, %v90_v6  ;;  %s98_s20 = scalar_lea.vmem [#allocation4], %s383_s11  ;;  %p237_p13 = scmp.ne.s32.totalorder %s118_s22, %s236_s23 }
  0x3b   :  { %v99_v7 = vld [vmem:[%s98_s20] sm:$0x1]  ;;  %p241_p0 = scmp.lt.s32.totalorder %s118_s22, %s118_s22  ;;  %p242_p1 = scmp.lt.s32.totalorder %s236_s23, %s236_s23 }
  0x3c   :  { %100 = vst.msk [vmem:[#allocation7 + $0x7] sm:$0x1] %vm36_vm0, %v99_v7 }
  0x3d   :  { %p243_p2 = por %p242_p1, %p241_p0 }
  0x3f   :  { %p244_p3 = pnand %p243_p2, %p237_p13 }
  0x43   :  { %v101_v8 = vld [vmem:[#allocation7] sm:$0xff] }
  0x44   :  { %v102_v9 = vmul.f32 %v101_v8, %v101_v8 }
  0x46   :  { %v104_v10 = vsel %vm103_vm1, %v102_v9, 0.0 }
  0x47   :  { %105 = vadd.xlane.f32.xlu0 %v104_v10 }
  0xd4   :  { %v106_v11 = vpop.xlane.xlu0 %105 }
  0xd5   :  { %v107_v12 = vmax.f32 %v106_v11, 1e-24 }
  0xd7   :  { %202 = vrsqrt.f32 %v107_v12 }
  0xe1   :  { %v203_v13 = vpop.eup %202 }
  0xe2   :  { %v109_v14 = vmul.f32 %v203_v13, %v101_v8 }
  0xe4   :  { %110 = vst.msk [vmem:[#allocation7] sm:$0xff] %vm103_vm1, %v109_v14 }
  0xe5   :  { %247 = shalt.err (!%p244_p3)
}
  0xe6   :  { %s248_s26 = scalar_lea.hbm %s355_s2, 128 }
  0xe7   :  { %p249_p4 = scmp.ne.s32.totalorder %s355_s2, %s248_s26  ;;  %p252_p5 = scmp.lt.u32.totalorder %s248_s26, %s355_s2 }
  0xe9   :  { %p254_p6 = pnand %p252_p5, %p249_p4 }
  0xeb   :  { %257 = shalt.err (!%p254_p6)
}
  0xec   :  { %120 = dma.vmem_to_hbm [thread:$0]  %s118_s22, 128, %s355_s2, [#allocation6]  }
  0xed   :  { %262 = dma.done.wait [#allocation6], 128  }
  0xee   :  { %263 = vsyncadd [#allocation6], 4294967168 }
  0xef   :  { %124 = vsyncpa [#allocation5], 1 }
  0xf0   :  { %125 = vsyncpa [#allocation6], 1 }

</bundles_post_ra>
